<compile_context>
chip_gen: v7x
topology: tpu7x:2x2x1
jax: 0.10.0
libtpu: 0.0.40
codegen_flags: <defaults>
</compile_context>

<pallas_src>
import jax
import jax.numpy as jnp
from jax.experimental import pallas as pl
from jax.experimental.pallas import tpu as pltpu

_LANE = 128
_VMEM_LIMIT = 56 * 1024 * 1024     # explicit scoped-VMEM request (safe on v7x's 64 MiB/TC)
_VMEM_BUDGET = 44 * 1024 * 1024    # planning budget; leaves headroom for compiler scratch


def _residual_block_kernel(x_ref, w_ref, gamma_ref, beta_ref, o_ref):
    """Fused Linear -> BatchNorm1d(train) -> LeakyReLU(0.01) -> +x for one
    feature tile.

    x_ref     : (N, F_pad) f32, full array, resident across the feature grid.
    w_ref     : (F_pad, TN) bf16, pre-transposed weight column tile (streamed).
    gamma/beta: (1, TN) f32.
    o_ref     : (N, TN) out dtype.
    """
    tn = o_ref.shape[1]
    j = pl.program_id(0)
    col = pl.multiple_of(j * tn, _LANE)

    # Linear: bf16 operands on the MXU, f32 accumulation. The in-kernel bf16
    # cast of x is VPU filler hidden under the MXU / W DMA.
    out = jnp.dot(x_ref[...].astype(jnp.bfloat16), w_ref[...],
                  preferred_element_type=jnp.float32)              # (N, TN) f32

    # NOTE: the Linear bias is intentionally omitted — under training-mode
    # BatchNorm a per-feature additive bias cancels exactly in (out - mean)
    # and does not change the variance, so it is dead work.

    # BatchNorm1d training-mode forward (biased variance), centered two-pass.
    n = out.shape[0]
    inv_n = 1.0 / n
    mean = jnp.sum(out, axis=0, keepdims=True) * inv_n             # (1, TN)
    cent = out - mean
    var = jnp.sum(cent * cent, axis=0, keepdims=True) * inv_n      # (1, TN)
    y = gamma_ref[...] * (cent * jax.lax.rsqrt(var + 1e-5)) + beta_ref[...]

    # LeakyReLU(0.01): single VALU max (exact since slope < 1).
    y = jnp.maximum(y, 0.01 * y)

    # Residual add from the resident f32 x block (no extra HBM DMA stream).
    x_res = x_ref[:, pl.ds(col, tn)]                               # (N, TN) f32
    o_ref[...] = (y + x_res).astype(o_ref.dtype)


def plan_tiling(n, f, out_dtype, budget_bytes=_VMEM_BUDGET):
    """Pick the feature tile width tn and padded feature count from a VMEM budget."""
    out_bytes = jnp.dtype(out_dtype).itemsize
    f128 = _LANE * pl.cdiv(f, _LANE)
    for tn in (512, 256, 128):
        if tn > f128:
            continue
        f_pad = tn * pl.cdiv(f, tn)          # pad F up to a multiple of tn
        need = (2 * n * f_pad * 4            # resident x (f32), double-buffered
                + 2 * f_pad * tn * 2         # streamed bf16 W tile, double-buffered
                + 2 * n * tn * out_bytes     # output tile, double-buffered
                + 4 * n * tn * 4)            # f32 BN/epilogue temporaries (approx)
        if need <= budget_bytes:
            return tn, f_pad
    # TODO(synk): for shapes where even tn=128 overflows the per-TC VMEM budget
    # (notably v7x's 64 MiB), switch to a K-tiled accumulator variant
    # (grid=(F//tn, F//tk), f32 VMEM scratch, BN/LeakyReLU/residual epilogue
    # under @pl.when(k == last)).
    return 128, f128


def prepare_params(w, gamma, beta, f_pad):
    """One-time parameter transform (hoist out of the per-call path):
    pad, transpose W to (F_in, F_out), cast W to bf16."""
    f = w.shape[0]
    pad = f_pad - f
    if pad:
        w = jnp.pad(w, ((0, pad), (0, pad)))
        gamma = jnp.pad(gamma, (0, pad))
        beta = jnp.pad(beta, (0, pad))
    w_t = jnp.transpose(w).astype(jnp.bfloat16)          # (F_in, F_out) bf16
    gamma2 = gamma.reshape(1, f_pad).astype(jnp.float32)
    beta2 = beta.reshape(1, f_pad).astype(jnp.float32)
    return w_t, gamma2, beta2


def residual_block_prepared(x, w_t, gamma2, beta2, *, tn):
    """Run the fused kernel given pre-prepared (padded / transposed / bf16) params."""
    n, f = x.shape
    f_pad = w_t.shape[0]
    out_dtype = x.dtype
    pad = f_pad - f
    x_p = jnp.pad(x, ((0, 0), (0, pad))) if pad else x

    out_bytes = jnp.dtype(out_dtype).itemsize
    cost = pl.CostEstimate(
        flops=2 * n * f_pad * f_pad,
        bytes_accessed=f_pad * f_pad * 2 + n * f_pad * (4 + out_bytes) + f_pad * 8,
        transcendentals=0,
    )

    out = pl.pallas_call(
        _residual_block_kernel,
        out_shape=jax.ShapeDtypeStruct((n, f_pad), out_dtype),
        grid=(f_pad // tn,),
        in_specs=[
            # Full x, f32, constant index_map -> resident across the feature
            # grid; feeds both the matmul LHS and the residual slice.
            # NOTE(v7x): this block could be single-buffered via
            # pipeline_mode=pl.Buffered(1) (constant index_map, nothing to
            # prefetch) to halve the largest VMEM resident.
            pl.BlockSpec((n, f_pad), lambda j: (0, 0)),
            pl.BlockSpec((f_pad, tn), lambda j: (0, j)),   # streamed W column tile
            pl.BlockSpec((1, tn), lambda j: (0, j)),       # gamma tile
            pl.BlockSpec((1, tn), lambda j: (0, j)),       # beta tile
        ],
        out_specs=pl.BlockSpec((n, tn), lambda j: (0, j)),
        compiler_params=pltpu.CompilerParams(
            dimension_semantics=("parallel",),             # megacore sharding on v7x
            vmem_limit_bytes=_VMEM_LIMIT,
        ),
        cost_estimate=cost,
    )(x_p, w_t, gamma2, beta2)

    return out[:, :f] if pad else out


def residual_block(x, w, b, gamma, beta):
    """Convenience wrapper matching the torch module's parameters.

    x: (N, F)   w: (F, F) torch layout (out_features, in_features)
    b, gamma, beta: (F,)

    `b` is accepted for API parity but unused: under training-mode BatchNorm1d
    a per-feature additive bias cancels exactly, so the forward output is
    identical without it. In real deployments call plan_tiling/prepare_params
    once and reuse `residual_block_prepared`.
    """
    del b
    n, f = x.shape
    assert w.shape == (f, f)
    tn, f_pad = plan_tiling(n, f, x.dtype)
    w_t, gamma2, beta2 = prepare_params(w, gamma, beta, f_pad)
    return residual_block_prepared(x, w_t, gamma2, beta2, tn=tn)


if __name__ == "__main__":
    key = jax.random.PRNGKey(0)
    k_x, k_w, k_b = jax.random.split(key, 3)

    batch, features = 8, 32  # BatchNorm1d input layout: (batch, features)
    # NOTE: this demo shape is overhead-dominated; tune on N >= 256, F >= 1024.

    x = jax.random.normal(k_x, (batch, features), dtype=jnp.float32)

    # Deterministic PyTorch-style init: uniform(-1/sqrt(F), 1/sqrt(F))
    bound = 1.0 / (features ** 0.5)
    w = jax.random.uniform(k_w, (features, features), jnp.float32, -bound, bound)
    b = jax.random.uniform(k_b, (features,), jnp.float32, -bound, bound)
    gamma = jnp.ones((features,), jnp.float32)   # BatchNorm1d default weight
    beta = jnp.zeros((features,), jnp.float32)   # BatchNorm1d default bias

    # Prepare parameters once (hoisted weight transpose/pad/cast), then run.
    tn, f_pad = plan_tiling(batch, features, x.dtype)
    w_t, gamma2, beta2 = prepare_params(w, gamma, beta, f_pad)

    # TODO(synk): BatchNorm1d running_mean/running_var buffer updates are not
    # modeled (forward output only).
    out = residual_block_prepared(x, w_t, gamma2, beta2, tn=tn)
    jax.block_until_ready(out)
    assert out.shape == (batch, features)
    print("KERNEL_OK")
</pallas_src>

<mosaic_0001>
module attributes {stable_mosaic.version = 11 : i64} {
  func.func @_residual_block_kernel(%arg0: i32, %arg1: memref<8x128xf32, #tpu.memory_space<vmem>>, %arg2: memref<128x128xbf16, #tpu.memory_space<vmem>>, %arg3: memref<1x128xf32, #tpu.memory_space<vmem>>, %arg4: memref<1x128xf32, #tpu.memory_space<vmem>>, %arg5: memref<8x128xf32, #tpu.memory_space<vmem>>) attributes {dimension_semantics = [#tpu.dimension_semantics<parallel>], iteration_bounds = array<i64: 1>, scalar_prefetch = 0 : i64, scratch_operands = 0 : i64, tpu.core_type = #tpu.core_type<tc>, window_params = [{pipeline_mode = #tpu.pipeline_mode<synchronous>, transform_indices = @transform_0, window_bounds = array<i64: 8, 128>}, {transform_indices = @transform_1, window_bounds = array<i64: 128, 128>}, {transform_indices = @transform_2, window_bounds = array<i64: 1, 128>}, {transform_indices = @transform_3, window_bounds = array<i64: 1, 128>}, {transform_indices = @transform_4, window_bounds = array<i64: 8, 128>}]} {
    %c128_i32 = arith.constant 128 : i32
    %0 = arith.muli %arg0, %c128_i32 : i32
    %1 = tpu.assume_multiple %0, 128 : i32
    %c0 = arith.constant 0 : index
    %c0_0 = arith.constant 0 : index
    %2 = vector.load %arg1[%c0, %c0_0] : memref<8x128xf32, #tpu.memory_space<vmem>>, vector<8x128xf32>
    %3 = arith.truncf %2 : vector<8x128xf32> to vector<8x128xbf16>
    %c0_1 = arith.constant 0 : index
    %c0_2 = arith.constant 0 : index
    %4 = vector.load %arg2[%c0_1, %c0_2] : memref<128x128xbf16, #tpu.memory_space<vmem>>, vector<128x128xbf16>
    %cst = arith.constant dense<0.000000e+00> : vector<8x128xf32>
    %5 = tpu.matmul %3, %4, %cst {dimension_numbers = #tpu.dot_dimension_numbers<[1], [0], [0], [1], [0, 0, 1, 1], [], []>} : vector<8x128xbf16>, vector<128x128xbf16>, vector<8x128xf32> -> vector<8x128xf32>
    %cst_3 = arith.constant dense<0.000000e+00> : vector<128xf32>
    %6 = vector.multi_reduction <add>, %5, %cst_3 [0] : vector<8x128xf32> to vector<128xf32>
    %7 = vector.shape_cast %6 : vector<128xf32> to vector<1x128xf32>
    %cst_4 = arith.constant 1.250000e-01 : f32
    %8 = vector.broadcast %cst_4 : f32 to vector<1x128xf32>
    %9 = arith.mulf %7, %8 : vector<1x128xf32>
    %10 = vector.broadcast %9 : vector<1x128xf32> to vector<8x128xf32>
    %11 = arith.subf %5, %10 : vector<8x128xf32>
    %12 = arith.mulf %11, %11 : vector<8x128xf32>
    %cst_5 = arith.constant dense<0.000000e+00> : vector<128xf32>
    %13 = vector.multi_reduction <add>, %12, %cst_5 [0] : vector<8x128xf32> to vector<128xf32>
    %14 = vector.shape_cast %13 : vector<128xf32> to vector<1x128xf32>
    %cst_6 = arith.constant 1.250000e-01 : f32
    %15 = vector.broadcast %cst_6 : f32 to vector<1x128xf32>
    %16 = arith.mulf %14, %15 : vector<1x128xf32>
    %c0_7 = arith.constant 0 : index
    %c0_8 = arith.constant 0 : index
    %17 = vector.load %arg3[%c0_7, %c0_8] : memref<1x128xf32, #tpu.memory_space<vmem>>, vector<1x128xf32>
    %cst_9 = arith.constant 9.99999974E-6 : f32
    %18 = vector.broadcast %cst_9 : f32 to vector<1x128xf32>
    %19 = arith.addf %16, %18 : vector<1x128xf32>
    %20 = math.rsqrt %19 : vector<1x128xf32>
    %21 = vector.broadcast %20 : vector<1x128xf32> to vector<8x128xf32>
    %22 = arith.mulf %11, %21 : vector<8x128xf32>
    %23 = vector.broadcast %17 : vector<1x128xf32> to vector<8x128xf32>
    %24 = arith.mulf %23, %22 : vector<8x128xf32>
    %c0_10 = arith.constant 0 : index
    %c0_11 = arith.constant 0 : index
    %25 = vector.load %arg4[%c0_10, %c0_11] : memref<1x128xf32, #tpu.memory_space<vmem>>, vector<1x128xf32>
    %26 = vector.broadcast %25 : vector<1x128xf32> to vector<8x128xf32>
    %27 = arith.addf %24, %26 : vector<8x128xf32>
    %cst_12 = arith.constant 0.00999999977 : f32
    %28 = vector.broadcast %cst_12 : f32 to vector<8x128xf32>
    %29 = arith.mulf %28, %27 : vector<8x128xf32>
    %30 = arith.maximumf %27, %29 : vector<8x128xf32>
    %c0_13 = arith.constant 0 : index
    %31 = arith.index_cast %1 : i32 to index
    %32 = vector.load %arg1[%c0_13, %31] : memref<8x128xf32, #tpu.memory_space<vmem>>, vector<8x128xf32>
    %33 = arith.addf %30, %32 : vector<8x128xf32>
    %c0_14 = arith.constant 0 : index
    %c0_15 = arith.constant 0 : index
    %34 = vector.load %arg5[%c0_14, %c0_15] : memref<8x128xf32, #tpu.memory_space<vmem>>, vector<8x128xf32>
    tpu.vector_store %arg5[%c0_14, %c0_15], %33 {strides = array<i32>} : memref<8x128xf32, #tpu.memory_space<vmem>>, vector<8x128xf32>,
    return
  }
  func.func @transform_0(%arg0: i32) -> (i32, i32) {
    %c0_i32 = arith.constant 0 : i32
    %c0_i32_0 = arith.constant 0 : i32
    %c0_i32_1 = arith.constant 0 : i32
    return %c0_i32, %c0_i32_0 : i32, i32
  }
  func.func @transform_1(%arg0: i32) -> (i32, i32) {
    %c0_i32 = arith.constant 0 : i32
    %c0_i32_0 = arith.constant 0 : i32
    return %c0_i32, %arg0 : i32, i32
  }
  func.func @transform_2(%arg0: i32) -> (i32, i32) {
    %c0_i32 = arith.constant 0 : i32
    %c0_i32_0 = arith.constant 0 : i32
    return %c0_i32, %arg0 : i32, i32
  }
  func.func @transform_3(%arg0: i32) -> (i32, i32) {
    %c0_i32 = arith.constant 0 : i32
    %c0_i32_0 = arith.constant 0 : i32
    return %c0_i32, %arg0 : i32, i32
  }
  func.func @transform_4(%arg0: i32) -> (i32, i32) {
    %c0_i32 = arith.constant 0 : i32
    %c0_i32_0 = arith.constant 0 : i32
    return %c0_i32, %arg0 : i32, i32
  }
}

</mosaic_0001>

<bundles_post_ra>
// kernel: tpu_custom_call.1
= control target key start
LH: loop header
LB: loop body
LE: loop exit
PB: predicated region body
PF: predicated region fallthrough
CT: control target
= control target key end

     0   :  { %9 = vsyncpa [#allocation3], 0  ;;  %s421_s0 = inlined_call_operand.hbm [shape: f32[8,128], index: 0, kind: input, shape index: {}]   ;;  %s422_s1 = inlined_call_operand.hbm [shape: bf16[128,128], index: 1, kind: input, shape index: {}]   ;;  %s423_s2 = inlined_call_operand.vmem [shape: f32[1,128], index: 2, kind: input, shape index: {}]   ;;  %s424_s3 = inlined_call_operand.vmem [shape: f32[1,128], index: 3, kind: input, shape index: {}]   ;;  %s425_s4 = inlined_call_operand.hbm [shape: f32[8,128], index: 4, kind: output, shape index: {}]  }
   0x1   :  { %10 = vsyncpa [#allocation6], 0 }
   0x2   :  { %11 = vsyncpa [#allocation4], 0  ;;  %s340_s15 = smov [#allocation2]   ;;  %s341_s17 = smov [#allocation5]  }
   0x3   :  { %s18_s16 = sshll.u32 %s340_s15, 4  ;;  %s27_s18 = sshll.u32 %s341_s17, 4  ;;  %s19_s16 = int_to_ptr.vmem [resolvable:$true] %s18_s16  ;;  %s372_s18 = int_to_ptr.vmem [resolvable:$true] %s27_s18 }
   0x4   :  { %s268_s21 = scalar_lea.hbm %s421_s0, 128 }
   0x5   :  { %p269_p0 = scmp.ne.s32.totalorder %s421_s0, %s268_s21  ;;  %p272_p1 = scmp.lt.u32.totalorder %s268_s21, %s421_s0 }
   0x7   :  { %p274_p2 = pnand %p272_p1, %p269_p0 }
   0x9   :  { %277 = shalt.err (!%p274_p2)
}
   0xa   :  { %s278_s26 = scalar_lea.vmem %s19_s16, 128  ;;  %p283_p4 = scmp.lt.s32.totalorder %s19_s16, %s19_s16 }
   0xb   :  { %p279_p3 = scmp.ne.s32.totalorder %s19_s16, %s278_s26  ;;  %p284_p5 = scmp.lt.s32.totalorder %s278_s26, %s278_s26 }
   0xd   :  { %p285_p6 = por %p284_p5, %p283_p4 }
   0xf   :  { %p286_p7 = pnand %p285_p6, %p279_p3 }
  0x11   :  { %289 = shalt.err (!%p286_p7)
}
  0x12   :  { %21 = dma.hbm_to_vmem [thread:$0]  %s421_s0, 128, %s19_s16, [#allocation3]  }
  0x13   :  { %s290_s5 = scalar_lea.hbm %s422_s1, 1024 }
  0x14   :  { %p291_p8 = scmp.ne.s32.totalorder %s422_s1, %s290_s5  ;;  %p294_p9 = scmp.lt.u32.totalorder %s290_s5, %s422_s1 }
  0x16   :  { %p296_p10 = pnand %p294_p9, %p291_p8 }
  0x18   :  { %299 = shalt.err (!%p296_p10)
}
  0x19   :  { %s300_s10 = scalar_lea.vmem %s372_s18, 1024  ;;  %p305_p12 = scmp.lt.s32.totalorder %s372_s18, %s372_s18 }
  0x1a   :  { %p301_p11 = scmp.ne.s32.totalorder %s372_s18, %s300_s10  ;;  %p306_p13 = scmp.lt.s32.totalorder %s300_s10, %s300_s10 }
  0x1c   :  { %p307_p0 = por %p306_p13, %p305_p12 }
  0x1e   :  { %p308_p1 = pnand %p307_p0, %p301_p11 }
  0x20   :  { %311 = shalt.err (!%p308_p1)
}
  0x21   :  { %s342_s0 = smov 64   ;;  %s343_s11 = smov 4  }
  0x22   :  { %33 = dma.hbm_to_vmem [thread:$0]  %s422_s1, 1024, %s372_s18, [#allocation6], %s342_s0, %s342_s0, %s343_s11  }
  0x23   :  { %334 = dma.done.wait [#allocation3], 128  }
  0x24   :  { %335 = vsyncadd [#allocation3], 4294967168 }
  0x25   :  { %336 = dma.done.wait [#allocation6], 1024  }
  0x26   :  { %337 = vsyncadd [#allocation6], 4294966272  ;;  %v344_v0 = vmov 0.0   ;;  %vm345_vm0 = vmmov 0   ;;  %v258_v1 = vld [vmem:[#allocation5] sm:$0xff]   ;;  %v259_v2 = vld [vmem:[#allocation5 + $0x8] sm:$0xff]  }
  0x27   :  { %231 = vmatprep.subr.bf16.mxu0 %v344_v0  ;;  %247 = vmatprep.mubr.msk.bf16.mxu0 %vm345_vm0, %v344_v0  ;;  %v260_v3 = vld [vmem:[#allocation5 + $0x10] sm:$0xff]   ;;  %v261_v4 = vld [vmem:[#allocation5 + $0x18] sm:$0xff]   ;;  %v262_v5 = vld [vmem:[#allocation5 + $0x20] sm:$0xff]   ;;  %s346_s17 = smov [#allocation7]  }
  0x28   :  { %232 = vmatpush3.bf16.msra.mxu0 %v258_v1  ;;  %v263_v6 = vld [vmem:[#allocation5 + $0x28] sm:$0xff]   ;;  %v264_v7 = vld [vmem:[#allocation5 + $0x30] sm:$0xff]   ;;  %v265_v8 = vld [vmem:[#allocation5 + $0x38] sm:$0xff]   ;;  %s201_s18 = sshll.u32 %s346_s17, 4  ;;  %s202_s18 = int_to_ptr.vmem [resolvable:$true] %s201_s18 }
  0x29   :  { %233 = vmatprep.subr.bf16.mxu0 %v344_v0  ;;  %v46_v9 = vld [vmem:[#allocation2] sm:$0xff]  ;;  %s312_s19 = scalar_lea.vmem %s202_s18, 128  ;;  %p317_p3 = scmp.lt.s32.totalorder %s202_s18, %s202_s18 }
  0x2a   :  { %v47_v10 = vpack.c.bf16 %v46_v9, %v46_v9  ;;  %v220_v33 = vld [vmem:[%s423_s2] ss:$0 sm:$0xff]  ;;  %p313_p2 = scmp.ne.s32.totalorder %s202_s18, %s312_s19  ;;  %p318_p4 = scmp.lt.s32.totalorder %s312_s19, %s312_s19 }
  0x2b   :  { %v221_v35 = vld [vmem:[%s424_s3] ss:$0 sm:$0xff] }
  0x2c   :  { %234 = vmatpush3.bf16.msra.mxu0 %v259_v2  ;;  %p319_p5 = por %p318_p4, %p317_p3 }
  0x2d   :  { %235 = vmatprep.subr.bf16.mxu0 %v344_v0 }
  0x2e   :  { %p320_p6 = pnand %p319_p5, %p313_p2 }
  0x30   :  { %236 = vmatpush3.bf16.msra.mxu0 %v260_v3 }
  0x31   :  { %237 = vmatprep.subr.bf16.mxu0 %v344_v0 }
  0x34   :  { %238 = vmatpush3.bf16.msra.mxu0 %v261_v4 }
  0x35   :  { %239 = vmatprep.subr.bf16.mxu0 %v344_v0 }
  0x38   :  { %240 = vmatpush3.bf16.msra.mxu0 %v262_v5 }
  0x39   :  { %241 = vmatprep.subr.bf16.mxu0 %v344_v0 }
  0x3c   :  { %242 = vmatpush3.bf16.msra.mxu0 %v263_v6 }
  0x3d   :  { %243 = vmatprep.subr.bf16.mxu0 %v344_v0 }
  0x40   :  { %244 = vmatpush3.bf16.msra.mxu0 %v264_v7 }
  0x41   :  { %245 = vmatprep.subr.bf16.mxu0 %v344_v0 }
  0x44   :  { %246 = vmatpush3.bf16.msra.mxu0 %v265_v8 }
  0x47   :  { %248 = vmatmul.mubr.bf16.vlgmr.msra.gmra.mrb[0].mxu0 %v47_v10 }
 0x11a   :  { %v146_v11 = vpop.f32.mrb[0].mxu0 }
 0x11b   :  { %v152_v12 = vrot.slane %v146_v11, 4  ;;  %v249_v13 = vpop.f32.mrb[1].mxu0 }
 0x11c   :  { %v149_v14 = vpop.f32.mrb[2].mxu0 }
 0x11d   :  { %v153_v15 = vadd.f32 %v152_v12, %v146_v11  ;;  %v250_v16 = vpop.f32.mrb[3].mxu0 }
 0x11f   :  { %v154_v17 = vrot.slane %v153_v15, 2 }
 0x121   :  { %v155_v18 = vadd.f32 %v154_v17, %v153_v15 }
 0x123   :  { %v156_v19 = vrot.slane %v155_v18, 1 }
 0x125   :  { %v157_v20 = vadd.f32 %v156_v19, %v155_v18 }
 0x127   :  { %v158_v21 = vmul.f32 0.125, %v157_v20 }
 0x129   :  { %v159_v22 = vsub.f32 %v146_v11, %v158_v21 }
 0x12b   :  { %v160_v23 = vmul.f32 %v159_v22, %v159_v22 }
 0x12d   :  { %v161_v24 = vrot.slane %v160_v23, 4 }
 0x12f   :  { %v162_v25 = vadd.f32 %v161_v24, %v160_v23 }
 0x131   :  { %v163_v26 = vrot.slane %v162_v25, 2 }
 0x133   :  { %v164_v27 = vadd.f32 %v163_v26, %v162_v25 }
 0x135   :  { %v165_v28 = vrot.slane %v164_v27, 1 }
 0x137   :  { %v166_v29 = vadd.f32 %v165_v28, %v164_v27 }
 0x139   :  { %v167_v30 = vmul.f32 0.125, %v166_v29 }
 0x13b   :  { %v169_v31 = vadd.f32 1e-05, %v167_v30 }
 0x13d   :  { %266 = vrsqrt.f32 %v169_v31 }
 0x147   :  { %v267_v32 = vpop.eup %266 }
 0x148   :  { %v171_v34 = vmul.f32 %v267_v32, %v159_v22 }
 0x14a   :  { %v178_v36 = vmul.f32 %v220_v33, %v171_v34 }
 0x14c   :  { %v186_v37 = vadd.f32 %v221_v35, %v178_v36 }
 0x14e   :  { %v187_v38 = vmul.f32 0.01, %v186_v37 }
 0x150   :  { %v188_v39 = vmax.f32 %v186_v37, %v187_v38 }
 0x152   :  { %v193_v40 = vadd.f32 %v188_v39, %v46_v9 }
 0x154   :  { %194 = vst [vmem:[#allocation7] sm:$0xff] %v193_v40 }
 0x155   :  { %323 = shalt.err (!%p320_p6)
}
 0x156   :  { %s324_s3 = scalar_lea.hbm %s425_s4, 128 }
 0x157   :  { %p325_p7 = scmp.ne.s32.totalorder %s425_s4, %s324_s3  ;;  %p328_p8 = scmp.lt.u32.totalorder %s324_s3, %s425_s4 }
 0x159   :  { %p330_p9 = pnand %p328_p8, %p325_p7 }
 0x15b   :  { %333 = shalt.err (!%p330_p9)
}
 0x15c   :  { %204 = dma.vmem_to_hbm [thread:$0]  %s202_s18, 128, %s425_s4, [#allocation4]  }
 0x15d   :  { %338 = dma.done.wait [#allocation4], 128  }
 0x15e   :  { %339 = vsyncadd [#allocation4], 4294967168 }
 0x15f   :  { %208 = vsyncpa [#allocation3], 1 }
 0x160   :  { %209 = vsyncpa [#allocation6], 1 }
 0x161   :  { %210 = vsyncpa [#allocation4], 1 }

</bundles_post_ra>
